<compile_context>
chip_gen: v7x
topology: tpu7x:2x2x1
jax: 0.10.0
libtpu: 0.0.40
codegen_flags: <defaults>
</compile_context>

<pallas_src>
import jax
import jax.numpy as jnp
from jax import lax
from jax.experimental import pallas as pl
from jax.experimental.pallas import tpu as pltpu

LANE = 128          # TPU lane width
SUB = 8             # f32 sublane quantum (channel padding target)
TN_MAX = 512        # spatial (lane-axis) tile
BN_EPS = 1e-5
LRELU_SLOPE = 0.02


def _round_up(v, m):
    return (v + m - 1) // m * m


def _conv_stats_kernel(w_ref, p_ref, o_ref, sum_ref, sq_ref):
    """(Cout_p, kk) @ (kk, TN) conv matmul + per-channel partial sum / sumsq.

    Zero-padded spatial columns contribute exactly 0 to both sums (no bias is added
    here), so no validity masking is required and the grid axis carries no
    accumulator -> fully parallel.
    """
    acc = jnp.dot(w_ref[...], p_ref[...], preferred_element_type=jnp.float32)
    o_ref[...] = acc
    s = jnp.sum(acc, axis=1, keepdims=True)          # lane (XLU) reduction, (Cp, 1)
    q = jnp.sum(acc * acc, axis=1, keepdims=True)
    # lane-replicated partial results; reduced across tiles in JAX afterwards
    sum_ref[...] = jnp.broadcast_to(s, sum_ref.shape)
    sq_ref[...] = jnp.broadcast_to(q, sq_ref.shape)


def _bn_lrelu_kernel(x_ref, scale_ref, shift_ref, o_ref):
    """y = leaky_relu(x * scale + shift, 0.02); scale/shift are per-channel (Cp, 1)."""
    y = x_ref[...] * scale_ref[...] + shift_ref[...]
    o_ref[...] = jnp.where(y >= 0, y, LRELU_SLOPE * y)


def _im2col_3d_T(x, k, stride, pad):
    """x: (N, Cin, D, H, W) -> patches^T (Cin*k^3, N*Do*Ho*Wo), channel-major rows."""
    n, cin, d, h, w = x.shape
    xp = jnp.pad(x, ((0, 0), (0, 0), (pad, pad), (pad, pad), (pad, pad)))
    do = (d + 2 * pad - k) // stride + 1
    ho = (h + 2 * pad - k) // stride + 1
    wo = (w + 2 * pad - k) // stride + 1
    slabs = []
    for dz in range(k):
        for dy in range(k):
            for dx in range(k):
                slabs.append(
                    xp[:, :,
                       dz:dz + stride * do:stride,
                       dy:dy + stride * ho:stride,
                       dx:dx + stride * wo:stride])
    # (k^3, N, Cin, Do, Ho, Wo) -> (Cin, k^3, N, Do, Ho, Wo): only major axes move,
    # the spatial minor dims stay contiguous (much cheaper relayout than channels-last).
    pat = jnp.stack(slabs, axis=0).transpose(2, 0, 1, 3, 4, 5)
    return pat.reshape(cin * k * k * k, n * do * ho * wo), (do, ho, wo)


def downsample_forward(x, conv_w, conv_b, gamma, beta, *, k, normalization=True):
    """Pallas implementation of downsample.forward (training-mode BatchNorm stats).

    x:       (N, Cin, D, H, W) float32 (NCDHW, like PyTorch)
    conv_w:  (Cout, Cin, k, k, k), conv_b/gamma/beta: (Cout,)
    returns: (N, Cout, Do, Ho, Wo) float32
    """
    n, cin, _, _, _ = x.shape
    cout = conv_w.shape[0]
    kk = cin * k * k * k

    # im2col in bf16 (halves the dominant HBM stream feeding the matmul)
    patches_t, (do, ho, wo) = _im2col_3d_T(x.astype(jnp.bfloat16), k, stride=2, pad=2)
    m = patches_t.shape[1]

    cp = _round_up(cout, SUB)                       # channels on the sublane axis
    tn = min(TN_MAX, _round_up(m, LANE))            # spatial tile on the lane axis
    mp = _round_up(m, tn)
    n_tiles = mp // tn

    patches_t = jnp.pad(patches_t, ((0, 0), (0, mp - m)))
    # (Cout, Cin, k, k, k) -> (Cout, Cin*k^3): same channel-major/offset-minor order
    # as the patch rows, so no transpose is needed for the weights.
    w2t = jnp.pad(conv_w.reshape(cout, kk).astype(jnp.bfloat16),
                  ((0, cp - cout), (0, 0)))

    compiler_params = pltpu.CompilerParams(
        dimension_semantics=("parallel",),          # no carried accumulator -> megacore OK
        vmem_limit_bytes=32 * 1024 * 1024,
    )

    conv_out, sum_part, sq_part = pl.pallas_call(
        _conv_stats_kernel,
        out_shape=(
            jax.ShapeDtypeStruct((cp, mp), jnp.float32),
            jax.ShapeDtypeStruct((cp, n_tiles * LANE), jnp.float32),
            jax.ShapeDtypeStruct((cp, n_tiles * LANE), jnp.float32),
        ),
        grid_spec=pltpu.PrefetchScalarGridSpec(
            num_scalar_prefetch=0,
            grid=(n_tiles,),
            in_specs=[
                pl.BlockSpec((cp, kk), lambda j: (0, 0)),   # weights (constant block)
                pl.BlockSpec((kk, tn), lambda j: (0, j)),   # patch tile
            ],
            out_specs=[
                pl.BlockSpec((cp, tn), lambda j: (0, j)),
                pl.BlockSpec((cp, LANE), lambda j: (0, j)),
                pl.BlockSpec((cp, LANE), lambda j: (0, j)),
            ],
        ),
        compiler_params=compiler_params,
    )(w2t, patches_t)

    # partial sums are lane-replicated inside each (cp, LANE) block
    ch_sum = sum_part.reshape(cp, n_tiles, LANE)[:, :, 0].sum(axis=1)
    ch_sq = sq_part.reshape(cp, n_tiles, LANE)[:, :, 0].sum(axis=1)

    if normalization:
        # conv bias is exactly cancelled by BN mean subtraction -> never added
        mean = ch_sum / m
        var = jnp.maximum(ch_sq / m - mean * mean, 0.0)   # biased var (PyTorch BN norm)
        gamma_p = jnp.pad(gamma, (0, cp - cout), constant_values=1.0)
        beta_p = jnp.pad(beta, (0, cp - cout))
        scale = gamma_p / jnp.sqrt(var + BN_EPS)
        shift = beta_p - mean * scale
    else:
        # no BN: fold the conv bias into the elementwise shift instead
        scale = jnp.ones((cp,), jnp.float32)
        shift = jnp.pad(conv_b.astype(jnp.float32), (0, cp - cout))

    out_flat = pl.pallas_call(
        _bn_lrelu_kernel,
        out_shape=jax.ShapeDtypeStruct((cp, mp), jnp.float32),
        grid_spec=pltpu.PrefetchScalarGridSpec(
            num_scalar_prefetch=0,
            grid=(n_tiles,),
            in_specs=[
                pl.BlockSpec((cp, tn), lambda j: (0, j)),
                pl.BlockSpec((cp, 1), lambda j: (0, 0)),
                pl.BlockSpec((cp, 1), lambda j: (0, 0)),
            ],
            out_specs=pl.BlockSpec((cp, tn), lambda j: (0, j)),
        ),
        input_output_aliases={0: 0},                # reuse the conv_out buffer in place
        compiler_params=compiler_params,
    )(conv_out,
      scale.reshape(cp, 1).astype(jnp.float32),
      shift.reshape(cp, 1).astype(jnp.float32))

    # (Cp, Mp) -> (N, Cout, Do, Ho, Wo)
    out = out_flat[:cout, :m].reshape(cout, n, do, ho, wo).transpose(1, 0, 2, 3, 4)
    return out


def _reference(x, conv_w, conv_b, gamma, beta, *, k, normalization=True):
    y = lax.conv_general_dilated(
        x, conv_w, window_strides=(2, 2, 2),
        padding=[(2, 2)] * 3,
        dimension_numbers=("NCDHW", "OIDHW", "NCDHW"),
        precision=lax.Precision.HIGHEST,
    ) + conv_b.reshape(1, -1, 1, 1, 1)
    if normalization:
        mean = jnp.mean(y, axis=(0, 2, 3, 4), keepdims=True)
        var = jnp.mean((y - mean) ** 2, axis=(0, 2, 3, 4), keepdims=True)
        y = (y - mean) / jnp.sqrt(var + BN_EPS)
        y = y * gamma.reshape(1, -1, 1, 1, 1) + beta.reshape(1, -1, 1, 1, 1)
    return jnp.where(y >= 0, y, LRELU_SLOPE * y)


if __name__ == "__main__":
    # downsample(input_size=4, output_size=8, k_size=4, normalization=True)
    N, CIN, COUT, K = 2, 4, 8, 4
    D = H = W = 8

    key = jax.random.PRNGKey(0)
    kx, kw, kb = jax.random.split(key, 3)
    x = jax.random.normal(kx, (N, CIN, D, H, W), jnp.float32)
    conv_w = 0.1 * jax.random.normal(kw, (COUT, CIN, K, K, K), jnp.float32)
    conv_b = 0.1 * jax.random.normal(kb, (COUT,), jnp.float32)
    gamma = jnp.ones((COUT,), jnp.float32)   # BatchNorm3d default affine init
    beta = jnp.zeros((COUT,), jnp.float32)

    fwd = jax.jit(downsample_forward, static_argnames=("k", "normalization"))
    out = fwd(x, conv_w, conv_b, gamma, beta, k=K, normalization=True)
    out = jax.block_until_ready(out)

    ref = _reference(x, conv_w, conv_b, gamma, beta, k=K, normalization=True)
    max_err = float(jnp.max(jnp.abs(out - ref)))
    assert out.shape == ref.shape, (out.shape, ref.shape)
    assert max_err < 3e-2, f"max abs error too large: {max_err}"   # bf16 matmul inputs
    print("KERNEL_OK")
</pallas_src>

<mosaic_0001>
module attributes {stable_mosaic.version = 11 : i64} {
  func.func @_conv_stats_kernel(%arg0: i32, %arg1: memref<8x256xbf16, #tpu.memory_space<vmem>>, %arg2: memref<256x256xbf16, #tpu.memory_space<vmem>>, %arg3: memref<8x256xf32, #tpu.memory_space<vmem>>, %arg4: memref<8x128xf32, #tpu.memory_space<vmem>>, %arg5: memref<8x128xf32, #tpu.memory_space<vmem>>) attributes {dimension_semantics = [#tpu.dimension_semantics<parallel>], iteration_bounds = array<i64: 1>, scalar_prefetch = 0 : i64, scratch_operands = 0 : i64, tpu.core_type = #tpu.core_type<tc>, window_params = [{pipeline_mode = #tpu.pipeline_mode<synchronous>, transform_indices = @transform_0, window_bounds = array<i64: 8, 256>}, {transform_indices = @transform_1, window_bounds = array<i64: 256, 256>}, {transform_indices = @transform_2, window_bounds = array<i64: 8, 256>}, {transform_indices = @transform_3, window_bounds = array<i64: 8, 128>}, {transform_indices = @transform_4, window_bounds = array<i64: 8, 128>}]} {
    %c0 = arith.constant 0 : index
    %c0_0 = arith.constant 0 : index
    %0 = vector.load %arg1[%c0, %c0_0] : memref<8x256xbf16, #tpu.memory_space<vmem>>, vector<8x256xbf16>
    %c0_1 = arith.constant 0 : index
    %c0_2 = arith.constant 0 : index
    %1 = vector.load %arg2[%c0_1, %c0_2] : memref<256x256xbf16, #tpu.memory_space<vmem>>, vector<256x256xbf16>
    %cst = arith.constant dense<0.000000e+00> : vector<8x256xf32>
    %2 = tpu.matmul %0, %1, %cst {dimension_numbers = #tpu.dot_dimension_numbers<[1], [0], [0], [1], [0, 0, 1, 1], [], []>} : vector<8x256xbf16>, vector<256x256xbf16>, vector<8x256xf32> -> vector<8x256xf32>
    %c0_3 = arith.constant 0 : index
    %c0_4 = arith.constant 0 : index
    %3 = vector.load %arg3[%c0_3, %c0_4] : memref<8x256xf32, #tpu.memory_space<vmem>>, vector<8x256xf32>
    tpu.vector_store %arg3[%c0_3, %c0_4], %2 {strides = array<i32>} : memref<8x256xf32, #tpu.memory_space<vmem>>, vector<8x256xf32>,
    %cst_5 = arith.constant dense<0.000000e+00> : vector<8xf32>
    %4 = vector.multi_reduction <add>, %2, %cst_5 [1] : vector<8x256xf32> to vector<8xf32>
    %5 = vector.shape_cast %4 : vector<8xf32> to vector<8x1xf32>
    %6 = arith.mulf %2, %2 : vector<8x256xf32>
    %cst_6 = arith.constant dense<0.000000e+00> : vector<8xf32>
    %7 = vector.multi_reduction <add>, %6, %cst_6 [1] : vector<8x256xf32> to vector<8xf32>
    %8 = vector.shape_cast %7 : vector<8xf32> to vector<8x1xf32>
    %9 = vector.shape_cast %5 : vector<8x1xf32> to vector<8x1xf32>
    %10 = vector.broadcast %9 : vector<8x1xf32> to vector<8x128xf32>
    %c0_7 = arith.constant 0 : index
    %c0_8 = arith.constant 0 : index
    %11 = vector.load %arg4[%c0_7, %c0_8] : memref<8x128xf32, #tpu.memory_space<vmem>>, vector<8x128xf32>
    tpu.vector_store %arg4[%c0_7, %c0_8], %10 {strides = array<i32>} : memref<8x128xf32, #tpu.memory_space<vmem>>, vector<8x128xf32>,
    %12 = vector.shape_cast %8 : vector<8x1xf32> to vector<8x1xf32>
    %13 = vector.broadcast %12 : vector<8x1xf32> to vector<8x128xf32>
    %c0_9 = arith.constant 0 : index
    %c0_10 = arith.constant 0 : index
    %14 = vector.load %arg5[%c0_9, %c0_10] : memref<8x128xf32, #tpu.memory_space<vmem>>, vector<8x128xf32>
    tpu.vector_store %arg5[%c0_9, %c0_10], %13 {strides = array<i32>} : memref<8x128xf32, #tpu.memory_space<vmem>>, vector<8x128xf32>,
    return
  }
  func.func @transform_0(%arg0: i32) -> (i32, i32) {
    %c0_i32 = arith.constant 0 : i32
    %c0_i32_0 = arith.constant 0 : i32
    %c0_i32_1 = arith.constant 0 : i32
    return %c0_i32, %c0_i32_0 : i32, i32
  }
  func.func @transform_1(%arg0: i32) -> (i32, i32) {
    %c0_i32 = arith.constant 0 : i32
    %c0_i32_0 = arith.constant 0 : i32
    return %c0_i32, %arg0 : i32, i32
  }
  func.func @transform_2(%arg0: i32) -> (i32, i32) {
    %c0_i32 = arith.constant 0 : i32
    %c0_i32_0 = arith.constant 0 : i32
    return %c0_i32, %arg0 : i32, i32
  }
  func.func @transform_3(%arg0: i32) -> (i32, i32) {
    %c0_i32 = arith.constant 0 : i32
    %c0_i32_0 = arith.constant 0 : i32
    return %c0_i32, %arg0 : i32, i32
  }
  func.func @transform_4(%arg0: i32) -> (i32, i32) {
    %c0_i32 = arith.constant 0 : i32
    %c0_i32_0 = arith.constant 0 : i32
    return %c0_i32, %arg0 : i32, i32
  }
}

module attributes {stable_mosaic.version = 11 : i64} {
  func.func @_bn_lrelu_kernel(%arg0: i32, %arg1: memref<8x256xf32, #tpu.memory_space<vmem>>, %arg2: memref<8x1xf32, #tpu.memory_space<vmem>>, %arg3: memref<8x1xf32, #tpu.memory_space<vmem>>, %arg4: memref<8x256xf32, #tpu.memory_space<vmem>>) attributes {dimension_semantics = [#tpu.dimension_semantics<parallel>], iteration_bounds = array<i64: 1>, scalar_prefetch = 0 : i64, scratch_operands = 0 : i64, tpu.core_type = #tpu.core_type<tc>, window_params = [{transform_indices = @transform_0, window_bounds = array<i64: 8, 256>}, {pipeline_mode = #tpu.pipeline_mode<synchronous>, transform_indices = @transform_1, window_bounds = array<i64: 8, 1>}, {pipeline_mode = #tpu.pipeline_mode<synchronous>, transform_indices = @transform_2, window_bounds = array<i64: 8, 1>}, {transform_indices = @transform_3, window_bounds = array<i64: 8, 256>}]} {
    %c0 = arith.constant 0 : index
    %c0_0 = arith.constant 0 : index
    %0 = vector.load %arg1[%c0, %c0_0] : memref<8x256xf32, #tpu.memory_space<vmem>>, vector<8x256xf32>
    %c0_1 = arith.constant 0 : index
    %c0_2 = arith.constant 0 : index
    %1 = vector.load %arg2[%c0_1, %c0_2] : memref<8x1xf32, #tpu.memory_space<vmem>>, vector<8x1xf32>
    %2 = vector.broadcast %1 : vector<8x1xf32> to vector<8x256xf32>
    %3 = arith.mulf %0, %2 : vector<8x256xf32>
    %c0_3 = arith.constant 0 : index
    %c0_4 = arith.constant 0 : index
    %4 = vector.load %arg3[%c0_3, %c0_4] : memref<8x1xf32, #tpu.memory_space<vmem>>, vector<8x1xf32>
    %5 = vector.broadcast %4 : vector<8x1xf32> to vector<8x256xf32>
    %6 = arith.addf %3, %5 : vector<8x256xf32>
    %cst = arith.constant 0.000000e+00 : f32
    %7 = vector.broadcast %cst : f32 to vector<8x256xf32>
    %8 = arith.cmpf oge, %6, %7 : vector<8x256xf32>
    %cst_5 = arith.constant 2.000000e-02 : f32
    %9 = vector.broadcast %cst_5 : f32 to vector<8x256xf32>
    %10 = arith.mulf %9, %6 : vector<8x256xf32>
    %11 = arith.select %8, %6, %10 : vector<8x256xi1>, vector<8x256xf32>
    %c0_6 = arith.constant 0 : index
    %c0_7 = arith.constant 0 : index
    %12 = vector.load %arg4[%c0_6, %c0_7] : memref<8x256xf32, #tpu.memory_space<vmem>>, vector<8x256xf32>
    tpu.vector_store %arg4[%c0_6, %c0_7], %11 {strides = array<i32>} : memref<8x256xf32, #tpu.memory_space<vmem>>, vector<8x256xf32>,
    return
  }
  func.func @transform_0(%arg0: i32) -> (i32, i32) {
    %c0_i32 = arith.constant 0 : i32
    %c0_i32_0 = arith.constant 0 : i32
    return %c0_i32, %arg0 : i32, i32
  }
  func.func @transform_1(%arg0: i32) -> (i32, i32) {
    %c0_i32 = arith.constant 0 : i32
    %c0_i32_0 = arith.constant 0 : i32
    %c0_i32_1 = arith.constant 0 : i32
    return %c0_i32, %c0_i32_0 : i32, i32
  }
  func.func @transform_2(%arg0: i32) -> (i32, i32) {
    %c0_i32 = arith.constant 0 : i32
    %c0_i32_0 = arith.constant 0 : i32
    %c0_i32_1 = arith.constant 0 : i32
    return %c0_i32, %c0_i32_0 : i32, i32
  }
  func.func @transform_3(%arg0: i32) -> (i32, i32) {
    %c0_i32 = arith.constant 0 : i32
    %c0_i32_0 = arith.constant 0 : i32
    return %c0_i32, %arg0 : i32, i32
  }
}

</mosaic_0001>

<bundles_post_ra>
// kernel: downsample_forward.3
= control target key start
LH: loop header
LB: loop body
LE: loop exit
PB: predicated region body
PF: predicated region fallthrough
CT: control target
= control target key end

     0   :  { %v46_v0 = vmov 0   ;;  %s85_s1 = inlined_call_operand.vmem [shape: f32[8,1], index: 1, kind: input, shape index: {}]   ;;  %s86_s2 = inlined_call_operand.vmem [shape: f32[8,1], index: 2, kind: input, shape index: {}]   ;;  %s87_s0 = inlined_call_operand.vmem [shape: f32[8,256], index: 0, kind: input, shape index: {}, may-alias: {0,3}]   ;;  %s88_s3 = inlined_call_operand.vmem [shape: f32[8,256], index: 3, kind: output, shape index: {}, may-alias: {0,3}]  }
   0x1   :  { %45 = vset.pattern.permute.xlu0 %v46_v0  ;;  %v16_v1 = vld [vmem:[%s85_s1] sm:$0xff]  ;;  %v15_v5 = vld [vmem:[%s87_s0 + $0x8] sm:$0xff] }
   0x2   :  { %19 = vperm.xlu0 %45, %v16_v1   ;;  %v24_v2 = vld [vmem:[%s86_s2] sm:$0xff] }
   0x3   :  { %v14_v4 = vld [vmem:[%s87_s0] sm:$0xff] }
   0x6   :  { %27 = vperm.xlu0 %45, %v24_v2  }
  0x81   :  { %v20_v3 = vpop.permute.xlu0 %19 }
  0x82   :  { %v22_v6 = vmul.f32 %v20_v3, %v14_v4  ;;  %v23_v7 = vmul.f32 %v20_v3, %v15_v5 }
  0x85   :  { %v28_v8 = vpop.permute.xlu0 %27 }
  0x86   :  { %v30_v9 = vadd.f32 %v28_v8, %v22_v6  ;;  %v31_v10 = vadd.f32 %v28_v8, %v23_v7 }
  0x88   :  { %vm32_vm0 = vcmp.ge.f32.partialorder %v30_v9, 0.0  ;;  %vm33_vm1 = vcmp.ge.f32.partialorder %v31_v10, 0.0  ;;  %v34_v11 = vmul.f32 0.02, %v30_v9  ;;  %v35_v12 = vmul.f32 0.02, %v31_v10 }
  0x8a   :  { %v36_v13 = vsel %vm32_vm0, %v30_v9, %v34_v11  ;;  %v37_v14 = vsel %vm33_vm1, %v31_v10, %v35_v12 }
  0x8b   :  { %38 = vst [vmem:[%s88_s3] sm:$0xff] %v36_v13  ;;  %39 = vst [vmem:[%s88_s3 + $0x8] sm:$0xff] %v37_v14 }

// kernel: downsample_forward.2
= control target key start
LH: loop header
LB: loop body
LE: loop exit
PB: predicated region body
PF: predicated region fallthrough
CT: control target
= control target key end

     0   :  { %s499_s1 = inlined_call_operand.vmem [shape: bf16[256,256], index: 1, kind: input, shape index: {}]   ;;  %s500_s0 = inlined_call_operand.vmem [shape: bf16[8,256], index: 0, kind: input, shape index: {}]   ;;  %s501_s2 = inlined_call_operand.vmem [shape: f32[8,256], index: 2, kind: output, shape index: {0}]   ;;  %s502_s3 = inlined_call_operand.vmem [shape: f32[8,128], index: 3, kind: output, shape index: {1}]   ;;  %s503_s4 = inlined_call_operand.vmem [shape: f32[8,128], index: 4, kind: output, shape index: {2}]  }
   0x1   :  { %v313_v0 = vld [vmem:[%s499_s1 + $0x4] ss:$8 sps:$4 sm:$0xff]   ;;  %v315_v1 = vld [vmem:[%s499_s1] ss:$8 sps:$4 sm:$0xff]   ;;  %v316_v2 = vld [vmem:[%s499_s1 + $0x14] ss:$8 sps:$4 sm:$0xff]  }
   0x2   :  { %214 = vmatprep.subr.bf16.mxu0 %v313_v0  ;;  %v318_v3 = vld [vmem:[%s499_s1 + $0x10] ss:$8 sps:$4 sm:$0xff]   ;;  %v319_v4 = vld [vmem:[%s499_s1 + $0x24] ss:$8 sps:$4 sm:$0xff]   ;;  %v321_v5 = vld [vmem:[%s499_s1 + $0x20] ss:$8 sps:$4 sm:$0xff]  }
   0x3   :  { %215 = vmatpush1.bf16.msra.mxu0 %v315_v1  ;;  %v322_v6 = vld [vmem:[%s499_s1 + $0x34] ss:$8 sps:$4 sm:$0xff]   ;;  %v324_v7 = vld [vmem:[%s499_s1 + $0x30] ss:$8 sps:$4 sm:$0xff]   ;;  %v325_v8 = vld [vmem:[%s499_s1 + $0x44] ss:$8 sps:$4 sm:$0xff]  }
   0x4   :  { %216 = vmatprep.subr.bf16.mxu0 %v316_v2  ;;  %v327_v9 = vld [vmem:[%s499_s1 + $0x40] ss:$8 sps:$4 sm:$0xff]   ;;  %v328_v10 = vld [vmem:[%s499_s1 + $0x54] ss:$8 sps:$4 sm:$0xff]   ;;  %v330_v11 = vld [vmem:[%s499_s1 + $0x50] ss:$8 sps:$4 sm:$0xff]  }
   0x5   :  { %v331_v12 = vld [vmem:[%s499_s1 + $0x64] ss:$8 sps:$4 sm:$0xff]   ;;  %v333_v15 = vld [vmem:[%s499_s1 + $0x60] ss:$8 sps:$4 sm:$0xff]   ;;  %v334_v16 = vld [vmem:[%s499_s1 + $0x74] ss:$8 sps:$4 sm:$0xff]  }
   0x6   :  { %v14_v13 = vld [vmem:[%s500_s0] sm:$0xff]  ;;  %v336_v17 = vld [vmem:[%s499_s1 + $0x70] ss:$8 sps:$4 sm:$0xff]   ;;  %v340_v20 = vld [vmem:[%s499_s1 + $0x94] ss:$8 sps:$4 sm:$0xff]  }
   0x7   :  { %217 = vmatpush1.bf16.msra.mxu0 %v318_v3  ;;  %v280_v14 = vcombine.high %v14_v13, %v14_v13  ;;  %v337_v18 = vld [vmem:[%s499_s1 + $0x84] ss:$8 sps:$4 sm:$0xff]   ;;  %v339_v19 = vld [vmem:[%s499_s1 + $0x80] ss:$8 sps:$4 sm:$0xff]   ;;  %v342_v21 = vld [vmem:[%s499_s1 + $0x90] ss:$8 sps:$4 sm:$0xff]   ;;  %v279_v34 = vcombine.low %v14_v13, %v14_v13 }
   0x8   :  { %218 = vmatprep.subr.bf16.mxu0 %v319_v4  ;;  %v343_v22 = vld [vmem:[%s499_s1 + $0xa4] ss:$8 sps:$4 sm:$0xff]   ;;  %v345_v23 = vld [vmem:[%s499_s1 + $0xa0] ss:$8 sps:$4 sm:$0xff]   ;;  %v346_v24 = vld [vmem:[%s499_s1 + $0xb4] ss:$8 sps:$4 sm:$0xff]  }
   0x9   :  { %246 = vmatprep.mubr.bf16.mxu0 %v280_v14  ;;  %v348_v25 = vld [vmem:[%s499_s1 + $0xb0] ss:$8 sps:$4 sm:$0xff]   ;;  %v349_v26 = vld [vmem:[%s499_s1 + $0xc4] ss:$8 sps:$4 sm:$0xff]   ;;  %v351_v27 = vld [vmem:[%s499_s1 + $0xc0] ss:$8 sps:$4 sm:$0xff]  }
   0xa   :  { %v352_v28 = vld [vmem:[%s499_s1 + $0xd4] ss:$8 sps:$4 sm:$0xff]   ;;  %v354_v29 = vld [vmem:[%s499_s1 + $0xd0] ss:$8 sps:$4 sm:$0xff]   ;;  %v355_v30 = vld [vmem:[%s499_s1 + $0xe4] ss:$8 sps:$4 sm:$0xff]  }
   0xb   :  { %219 = vmatpush1.bf16.msra.mxu0 %v321_v5  ;;  %v357_v31 = vld [vmem:[%s499_s1 + $0xe0] ss:$8 sps:$4 sm:$0xff]   ;;  %v358_v32 = vld [vmem:[%s499_s1 + $0xf4] ss:$8 sps:$4 sm:$0xff]   ;;  %v360_v33 = vld [vmem:[%s499_s1 + $0xf0] ss:$8 sps:$4 sm:$0xff]  }
   0xc   :  { %220 = vmatprep.subr.bf16.mxu0 %v322_v6 }
   0xf   :  { %221 = vmatpush1.bf16.msra.mxu0 %v324_v7 }
  0x10   :  { %222 = vmatprep.subr.bf16.mxu0 %v325_v8 }
  0x13   :  { %223 = vmatpush1.bf16.msra.mxu0 %v327_v9 }
  0x14   :  { %224 = vmatprep.subr.bf16.mxu0 %v328_v10 }
  0x17   :  { %225 = vmatpush1.bf16.msra.mxu0 %v330_v11 }
  0x18   :  { %226 = vmatprep.subr.bf16.mxu0 %v331_v12 }
  0x1b   :  { %227 = vmatpush1.bf16.msra.mxu0 %v333_v15 }
  0x1c   :  { %228 = vmatprep.subr.bf16.mxu0 %v334_v16 }
  0x1f   :  { %229 = vmatpush1.bf16.msra.mxu0 %v336_v17 }
  0x20   :  { %230 = vmatprep.subr.bf16.mxu0 %v337_v18 }
  0x23   :  { %231 = vmatpush1.bf16.msra.mxu0 %v339_v19 }
  0x24   :  { %232 = vmatprep.subr.bf16.mxu0 %v340_v20 }
  0x27   :  { %233 = vmatpush1.bf16.msra.mxu0 %v342_v21 }
  0x28   :  { %234 = vmatprep.subr.bf16.mxu0 %v343_v22 }
  0x2b   :  { %235 = vmatpush1.bf16.msra.mxu0 %v345_v23 }
  0x2c   :  { %236 = vmatprep.subr.bf16.mxu0 %v346_v24 }
  0x2f   :  { %237 = vmatpush1.bf16.msra.mxu0 %v348_v25 }
  0x30   :  { %238 = vmatprep.subr.bf16.mxu0 %v349_v26 }
  0x33   :  { %239 = vmatpush1.bf16.msra.mxu0 %v351_v27 }
  0x34   :  { %240 = vmatprep.subr.bf16.mxu0 %v352_v28 }
  0x37   :  { %241 = vmatpush1.bf16.msra.mxu0 %v354_v29 }
  0x38   :  { %242 = vmatprep.subr.bf16.mxu0 %v355_v30 }
  0x3b   :  { %243 = vmatpush1.bf16.msra.mxu0 %v357_v31 }
  0x3c   :  { %244 = vmatprep.subr.bf16.mxu0 %v358_v32 }
  0x3f   :  { %245 = vmatpush1.bf16.msra.mxu0 %v360_v33 }
  0x42   :  { %247 = vmatmul.mubr.bf16.vlgmr.msra.gmra.mrb[0].mxu0 %v279_v34 }
 0x115   :  { %v248_v35 = vpop.f32.mrb[0].mxu0 }
 0x116   :  { %255 = vst [vmem:[%s501_s2] sm:$0xff] %v248_v35  ;;  %v250_v36 = vpop.f32.mrb[1].mxu0  ;;  %v260_v37 = vmul.f32 %v248_v35, %v248_v35 }
 0x117   :  { %256 = vst [vmem:[%s501_s2 + $0x8] sm:$0xff] %v250_v36  ;;  %v252_v38 = vpop.f32.mrb[2].mxu0  ;;  %v257_v39 = vadd.f32 %v250_v36, %v248_v35  ;;  %v261_v40 = vmul.f32 %v250_v36, %v250_v36 }
 0x118   :  { %v253_v41 = vpop.f32.mrb[3].mxu0 }
 0x119   :  { %258 = vadd.xlane.f32.xlu0 %v257_v39  ;;  %v262_v42 = vadd.f32 %v261_v40, %v260_v37 }
 0x11d   :  { %263 = vadd.xlane.f32.xlu0 %v262_v42 }
 0x1a6   :  { %v259_v43 = vpop.xlane.xlu0 %258 }
 0x1a7   :  { %265 = vst [vmem:[%s502_s3] sm:$0xff] %v259_v43 }
 0x1aa   :  { %v264_v44 = vpop.xlane.xlu0 %263 }
 0x1ab   :  { %266 = vst [vmem:[%s503_s4] sm:$0xff] %v264_v44 }

</bundles_post_ra>
